<compile_context>
chip_gen: v7x
topology: tpu7x:2x2x1
jax: 0.10.0
libtpu: 0.0.40
codegen_flags: <defaults>
</compile_context>

<pallas_src>
import jax
import jax.numpy as jnp
from jax.experimental import pallas as pl
from jax.experimental.pallas import tpu as pltpu

EPS = 1e-5  # nn.LayerNorm default


def _round_up(x, m):
    return ((x + m - 1) // m) * m


def prenorm_kernel(x_ref, gamma_ref, beta_ref, w_ref, b_ref, o_ref):
    # x_ref: (tm, C).  LayerNorm over the last (lane) axis, then fused Linear
    # column panel: out = LN(x) @ W[:, j*tn:(j+1)*tn] + b[j*tn:(j+1)*tn].
    x = x_ref[...].astype(jnp.float32)

    # One-pass mean / variance: one extra XLU reduction instead of a second
    # full centered VPU pass.
    mean = jnp.mean(x, axis=-1, keepdims=True)
    mean_sq = jnp.mean(x * x, axis=-1, keepdims=True)
    var = jnp.maximum(mean_sq - mean * mean, 0.0)
    inv = jax.lax.rsqrt(var + EPS)

    # gamma folded into the scale; gamma/beta arrive already in f32 (no
    # per-step re-casts of resident parameters).
    scale = inv * gamma_ref[...]
    y = (x - mean) * scale + beta_ref[...]

    # MXU matmul: bf16 operands, f32 accumulation.
    out = jnp.dot(y.astype(jnp.bfloat16), w_ref[...],
                  preferred_element_type=jnp.float32) + b_ref[...]
    o_ref[...] = out.astype(o_ref.dtype)


def _pick_col_tile(C):
    # Output-column tile for the fused Linear.  Prefer a lane-dense multiple
    # of 128 that divides C (bounds the weight's VMEM footprint to C*tn bytes,
    # which is what the v7x 64 MiB budget needs); otherwise use full width.
    if C % 128 == 0:
        for tn in (512, 384, 256, 128):
            if C % tn == 0:
                return tn
    return C


def prenorm(x, gamma, beta, w, b, *, tm=256):
    """fn(LayerNorm(x)) with fn = Linear(C, C).  x: (B, N, C)."""
    B, N, C = x.shape
    rows = B * N
    x2 = x.reshape(rows, C)

    # Row tile: big enough to amortize per-grid-step overhead and fill the
    # MXU M dimension; clamp for tiny inputs, keep a multiple of 8 sublanes.
    tm = max(8, _round_up(min(tm, _round_up(rows, 8)), 8))
    rows_p = _round_up(rows, tm)
    if rows_p != rows:
        x2 = jnp.pad(x2, ((0, rows_p - rows), (0, 0)))  # padded rows sliced off below

    tn = _pick_col_tile(C)

    # Prepare parameters once (kernel body never re-casts resident blocks).
    gamma2 = gamma.reshape(1, C).astype(jnp.float32)
    beta2 = beta.reshape(1, C).astype(jnp.float32)
    w_bf16 = w.astype(jnp.bfloat16)   # MXU-native operand dtype, halves VMEM
    b2 = b.reshape(1, C).astype(jnp.float32)

    grid = (rows_p // tm, C // tn)

    # Explicit VMEM budget: double-buffered x/out tiles + bf16 weight panel
    # (+ small params), 2x headroom, clamped inside v7x's 64 MiB physical VMEM.
    est = (2 * tm * C * x2.dtype.itemsize
           + 2 * tm * tn * x2.dtype.itemsize
           + 2 * C * tn * 2
           + 4 * C * 4)
    vmem_limit = int(min(max(32 << 20, 2 * est), 64 << 20))

    out2 = pl.pallas_call(
        prenorm_kernel,
        out_shape=jax.ShapeDtypeStruct((rows_p, C), x.dtype),
        grid_spec=pltpu.PrefetchScalarGridSpec(
            num_scalar_prefetch=0,
            grid=grid,
            in_specs=[
                pl.BlockSpec((tm, C), lambda i, j: (i, 0)),   # x rows
                pl.BlockSpec((1, C), lambda i, j: (0, 0)),    # LN gamma (resident)
                pl.BlockSpec((1, C), lambda i, j: (0, 0)),    # LN beta  (resident)
                pl.BlockSpec((C, tn), lambda i, j: (0, j)),   # fn weight column panel
                pl.BlockSpec((1, tn), lambda i, j: (0, j)),   # fn bias column panel
            ],
            out_specs=pl.BlockSpec((tm, tn), lambda i, j: (i, j)),
        ),
        compiler_params=pltpu.CompilerParams(
            dimension_semantics=("parallel", "parallel"),
            vmem_limit_bytes=vmem_limit),
    )(x2, gamma2, beta2, w_bf16, b2)

    return out2[:rows].reshape(B, N, C)


if __name__ == "__main__":
    B, N, C = 2, 8, 32
    key = jax.random.PRNGKey(0)
    kx, kw, kb = jax.random.split(key, 3)

    x = jax.random.normal(kx, (B, N, C), dtype=jnp.float32)

    # Deterministic parameter init (synthetic, no checkpoint):
    gamma = jnp.ones((C,), dtype=jnp.float32)          # nn.LayerNorm weight init
    beta = jnp.zeros((C,), dtype=jnp.float32)          # nn.LayerNorm bias init
    # fn = Linear(C, C); weight stored as (in, out) so kernel does y @ W + b
    w = (jax.random.normal(kw, (C, C), dtype=jnp.float32) / jnp.sqrt(C)).astype(jnp.float32)
    b = (jax.random.normal(kb, (C,), dtype=jnp.float32) * 0.01).astype(jnp.float32)

    out = prenorm(x, gamma, beta, w, b)
    jax.block_until_ready(out)

    # Sanity check vs a pure-JAX f32 reference.  Tolerance is loosened to
    # account for the bf16 MXU operand cast (f32 accumulation preserved).
    mean = jnp.mean(x, axis=-1, keepdims=True)
    var = jnp.mean((x - mean) ** 2, axis=-1, keepdims=True)
    y_ref = (x - mean) / jnp.sqrt(var + EPS) * gamma + beta
    out_ref = y_ref @ w + b
    assert out.shape == out_ref.shape
    assert jnp.allclose(out, out_ref, atol=2e-2, rtol=2e-2), "mismatch vs reference"

    print("KERNEL_OK")
</pallas_src>

<mosaic_0001>
module attributes {stable_mosaic.version = 11 : i64} {
  func.func @prenorm_kernel(%arg0: i32, %arg1: i32, %arg2: memref<16x32xf32, #tpu.memory_space<vmem>>, %arg3: memref<1x32xf32, #tpu.memory_space<vmem>>, %arg4: memref<1x32xf32, #tpu.memory_space<vmem>>, %arg5: memref<32x32xbf16, #tpu.memory_space<vmem>>, %arg6: memref<1x32xf32, #tpu.memory_space<vmem>>, %arg7: memref<16x32xf32, #tpu.memory_space<vmem>>) attributes {dimension_semantics = [#tpu.dimension_semantics<parallel>, #tpu.dimension_semantics<parallel>], iteration_bounds = array<i64: 1, 1>, scalar_prefetch = 0 : i64, scratch_operands = 0 : i64, tpu.core_type = #tpu.core_type<tc>, window_params = [{transform_indices = @transform_0, window_bounds = array<i64: 16, 32>}, {pipeline_mode = #tpu.pipeline_mode<synchronous>, transform_indices = @transform_1, window_bounds = array<i64: 1, 32>}, {pipeline_mode = #tpu.pipeline_mode<synchronous>, transform_indices = @transform_2, window_bounds = array<i64: 1, 32>}, {transform_indices = @transform_3, window_bounds = array<i64: 32, 32>}, {transform_indices = @transform_4, window_bounds = array<i64: 1, 32>}, {transform_indices = @transform_5, window_bounds = array<i64: 16, 32>}]} {
    %c0 = arith.constant 0 : index
    %c0_0 = arith.constant 0 : index
    %0 = vector.load %arg2[%c0, %c0_0] : memref<16x32xf32, #tpu.memory_space<vmem>>, vector<16x32xf32>
    %cst = arith.constant dense<0.000000e+00> : vector<16xf32>
    %1 = vector.multi_reduction <add>, %0, %cst [1] : vector<16x32xf32> to vector<16xf32>
    %2 = vector.shape_cast %1 : vector<16xf32> to vector<16x1xf32>
    %cst_1 = arith.constant 3.200000e+01 : f32
    %3 = vector.broadcast %cst_1 : f32 to vector<16x1xf32>
    %4 = arith.divf %2, %3 : vector<16x1xf32>
    %5 = arith.mulf %0, %0 : vector<16x32xf32>
    %cst_2 = arith.constant dense<0.000000e+00> : vector<16xf32>
    %6 = vector.multi_reduction <add>, %5, %cst_2 [1] : vector<16x32xf32> to vector<16xf32>
    %7 = vector.shape_cast %6 : vector<16xf32> to vector<16x1xf32>
    %cst_3 = arith.constant 3.200000e+01 : f32
    %8 = vector.broadcast %cst_3 : f32 to vector<16x1xf32>
    %9 = arith.divf %7, %8 : vector<16x1xf32>
    %10 = arith.mulf %4, %4 : vector<16x1xf32>
    %11 = arith.subf %9, %10 : vector<16x1xf32>
    %cst_4 = arith.constant 0.000000e+00 : f32
    %12 = vector.broadcast %cst_4 : f32 to vector<16x1xf32>
    %13 = arith.maximumf %11, %12 : vector<16x1xf32>
    %cst_5 = arith.constant 9.99999974E-6 : f32
    %14 = vector.broadcast %cst_5 : f32 to vector<16x1xf32>
    %15 = arith.addf %13, %14 : vector<16x1xf32>
    %16 = math.rsqrt %15 : vector<16x1xf32>
    %c0_6 = arith.constant 0 : index
    %c0_7 = arith.constant 0 : index
    %17 = vector.load %arg3[%c0_6, %c0_7] : memref<1x32xf32, #tpu.memory_space<vmem>>, vector<1x32xf32>
    %18 = vector.broadcast %16 : vector<16x1xf32> to vector<16x32xf32>
    %19 = vector.broadcast %17 : vector<1x32xf32> to vector<16x32xf32>
    %20 = arith.mulf %18, %19 : vector<16x32xf32>
    %21 = vector.broadcast %4 : vector<16x1xf32> to vector<16x32xf32>
    %22 = arith.subf %0, %21 : vector<16x32xf32>
    %23 = arith.mulf %22, %20 : vector<16x32xf32>
    %c0_8 = arith.constant 0 : index
    %c0_9 = arith.constant 0 : index
    %24 = vector.load %arg4[%c0_8, %c0_9] : memref<1x32xf32, #tpu.memory_space<vmem>>, vector<1x32xf32>
    %25 = vector.broadcast %24 : vector<1x32xf32> to vector<16x32xf32>
    %26 = arith.addf %23, %25 : vector<16x32xf32>
    %27 = arith.truncf %26 : vector<16x32xf32> to vector<16x32xbf16>
    %c0_10 = arith.constant 0 : index
    %c0_11 = arith.constant 0 : index
    %28 = vector.load %arg5[%c0_10, %c0_11] : memref<32x32xbf16, #tpu.memory_space<vmem>>, vector<32x32xbf16>
    %cst_12 = arith.constant dense<0.000000e+00> : vector<16x32xf32>
    %29 = tpu.matmul %27, %28, %cst_12 {dimension_numbers = #tpu.dot_dimension_numbers<[1], [0], [0], [1], [0, 0, 1, 1], [], []>} : vector<16x32xbf16>, vector<32x32xbf16>, vector<16x32xf32> -> vector<16x32xf32>
    %c0_13 = arith.constant 0 : index
    %c0_14 = arith.constant 0 : index
    %30 = vector.load %arg6[%c0_13, %c0_14] : memref<1x32xf32, #tpu.memory_space<vmem>>, vector<1x32xf32>
    %31 = vector.broadcast %30 : vector<1x32xf32> to vector<16x32xf32>
    %32 = arith.addf %29, %31 : vector<16x32xf32>
    %c0_15 = arith.constant 0 : index
    %c0_16 = arith.constant 0 : index
    %33 = vector.load %arg7[%c0_15, %c0_16] : memref<16x32xf32, #tpu.memory_space<vmem>>, vector<16x32xf32>
    tpu.vector_store %arg7[%c0_15, %c0_16], %32 {strides = array<i32>} : memref<16x32xf32, #tpu.memory_space<vmem>>, vector<16x32xf32>,
    return
  }
  func.func @transform_0(%arg0: i32, %arg1: i32) -> (i32, i32) {
    %c0_i32 = arith.constant 0 : i32
    %c0_i32_0 = arith.constant 0 : i32
    return %arg0, %c0_i32 : i32, i32
  }
  func.func @transform_1(%arg0: i32, %arg1: i32) -> (i32, i32) {
    %c0_i32 = arith.constant 0 : i32
    %c0_i32_0 = arith.constant 0 : i32
    %c0_i32_1 = arith.constant 0 : i32
    return %c0_i32, %c0_i32_0 : i32, i32
  }
  func.func @transform_2(%arg0: i32, %arg1: i32) -> (i32, i32) {
    %c0_i32 = arith.constant 0 : i32
    %c0_i32_0 = arith.constant 0 : i32
    %c0_i32_1 = arith.constant 0 : i32
    return %c0_i32, %c0_i32_0 : i32, i32
  }
  func.func @transform_3(%arg0: i32, %arg1: i32) -> (i32, i32) {
    %c0_i32 = arith.constant 0 : i32
    %c0_i32_0 = arith.constant 0 : i32
    return %c0_i32, %arg1 : i32, i32
  }
  func.func @transform_4(%arg0: i32, %arg1: i32) -> (i32, i32) {
    %c0_i32 = arith.constant 0 : i32
    %c0_i32_0 = arith.constant 0 : i32
    return %c0_i32, %arg1 : i32, i32
  }
  func.func @transform_5(%arg0: i32, %arg1: i32) -> (i32, i32) {
    %c0_i32 = arith.constant 0 : i32
    return %arg0, %arg1 : i32, i32
  }
}

</mosaic_0001>

<bundles_post_ra>
// kernel: tpu_custom_call.1
= control target key start
LH: loop header
LB: loop body
LE: loop exit
PB: predicated region body
PF: predicated region fallthrough
CT: control target
= control target key end

     0   :  { %10 = vsyncpa [#allocation3], 0  ;;  %s393_s0 = inlined_call_operand.hbm [shape: f32[16,32], index: 0, kind: input, shape index: {}]   ;;  %s394_s1 = inlined_call_operand.vmem [shape: f32[1,32], index: 1, kind: input, shape index: {}]   ;;  %s395_s2 = inlined_call_operand.vmem [shape: f32[1,32], index: 2, kind: input, shape index: {}]   ;;  %s396_s3 = inlined_call_operand.hbm [shape: bf16[32,32], index: 3, kind: input, shape index: {}]   ;;  %s397_s4 = inlined_call_operand.vmem [shape: f32[1,32], index: 4, kind: input, shape index: {}]   ;;  %s398_s5 = inlined_call_operand.hbm [shape: f32[16,32], index: 5, kind: output, shape index: {}]  }
   0x1   :  { %11 = vsyncpa [#allocation6], 0 }
   0x2   :  { %12 = vsyncpa [#allocation4], 0  ;;  %s296_s18 = smov [#allocation2]   ;;  %s224_s22 = scalar_lea.hbm %s393_s0, 256 }
   0x3   :  { %s18_s19 = sshll.u32 %s296_s18, 4  ;;  %p225_p0 = scmp.ne.s32.totalorder %s393_s0, %s224_s22  ;;  %s19_s19 = int_to_ptr.vmem [resolvable:$true] %s18_s19 }
   0x4   :  { %p228_p1 = scmp.lt.u32.totalorder %s224_s22, %s393_s0 }
   0x6   :  { %p230_p2 = pnand %p228_p1, %p225_p0 }
   0x8   :  { %233 = shalt.err (!%p230_p2)
}
   0x9   :  { %s234_s27 = scalar_lea.vmem %s19_s19, 256  ;;  %p239_p4 = scmp.lt.s32.totalorder %s19_s19, %s19_s19 }
   0xa   :  { %p235_p3 = scmp.ne.s32.totalorder %s19_s19, %s234_s27  ;;  %p240_p5 = scmp.lt.s32.totalorder %s234_s27, %s234_s27 }
   0xc   :  { %p241_p6 = por %p240_p5, %p239_p4 }
   0xe   :  { %p242_p7 = pnand %p241_p6, %p235_p3 }
  0x10   :  { %245 = shalt.err (!%p242_p7)
}
  0x11   :  { %s297_s28 = smov 128   ;;  %s298_s29 = smov 8  }
  0x12   :  { %24 = dma.hbm_to_vmem [thread:$0]  %s393_s0, 256, %s19_s19, [#allocation3], %s297_s28, %s297_s28, %s298_s29  }
  0x13   :  { %s299_s7 = smov [#allocation5]   ;;  %s246_s11 = scalar_lea.hbm %s396_s3, 256 }
  0x14   :  { %s34_s8 = sshll.u32 %s299_s7, 4  ;;  %p247_p8 = scmp.ne.s32.totalorder %s396_s3, %s246_s11  ;;  %s35_s8 = int_to_ptr.vmem [resolvable:$true] %s34_s8 }
  0x15   :  { %p250_p9 = scmp.lt.u32.totalorder %s246_s11, %s396_s3 }
  0x17   :  { %p252_p10 = pnand %p250_p9, %p247_p8 }
  0x19   :  { %255 = shalt.err (!%p252_p10)
}
  0x1a   :  { %s256_s16 = scalar_lea.vmem %s35_s8, 256  ;;  %p261_p12 = scmp.lt.s32.totalorder %s35_s8, %s35_s8 }
  0x1b   :  { %p257_p11 = scmp.ne.s32.totalorder %s35_s8, %s256_s16  ;;  %p262_p13 = scmp.lt.s32.totalorder %s256_s16, %s256_s16 }
  0x1d   :  { %p263_p0 = por %p262_p13, %p261_p12 }
  0x1f   :  { %p264_p1 = pnand %p263_p0, %p257_p11 }
  0x21   :  { %267 = shalt.err (!%p264_p1)
}
  0x22   :  { %s300_s0 = smov 64   ;;  %s301_s17 = smov 4  }
  0x23   :  { %40 = dma.hbm_to_vmem [thread:$0]  %s396_s3, 256, %s35_s8, [#allocation6], %s300_s0, %s300_s0, %s301_s17  }
  0x24   :  { %290 = dma.done.wait [#allocation3], 256  }
  0x25   :  { %291 = vsyncadd [#allocation3], 4294967040 }
  0x26   :  { %292 = dma.done.wait [#allocation6], 256  }
  0x27   :  { %293 = vsyncadd [#allocation6], 4294967040  ;;  %vm52_vm0 = vcmask 261120   ;;  %v50_v0 = vld [vmem:[#allocation2] sm:$0xff]  ;;  %v51_v1 = vld [vmem:[#allocation2 + $0x8] sm:$0xff]  ;;  %v302_v9 = vmov 0.0  }
  0x28   :  { %v53_v2 = vsel %vm52_vm0, %v50_v0, 0.0  ;;  %v62_v3 = vmul.f32 %v50_v0, %v50_v0  ;;  %v63_v4 = vmul.f32 %v51_v1, %v51_v1  ;;  %v56_v6 = vsel %vm52_vm0, %v51_v1, 0.0  ;;  %v218_v8 = vld [vmem:[#allocation5] sm:$0xff]   ;;  %201 = vmatprep.subr.bf16.mxu0 %v302_v9  ;;  %v219_v10 = vld [vmem:[#allocation5 + $0x8] sm:$0xff]   ;;  %v192_v27 = vld [vmem:[%s394_s1] ss:$0 sm:$0xff] }
  0x29   :  { %54 = vadd.xlane.f32.xlu0 %v53_v2  ;;  %vm303_vm1 = vmmov 0   ;;  %202 = vmatpush3.bf16.msra.mxu0 %v218_v8  ;;  %v193_v35 = vld [vmem:[%s395_s2] ss:$0 sm:$0xff]  ;;  %s304_s1 = smov [#allocation7]  }
  0x2a   :  { %v64_v5 = vsel %vm52_vm0, %v62_v3, 0.0  ;;  %v67_v7 = vsel %vm52_vm0, %v63_v4, 0.0  ;;  %205 = vmatprep.mubr.msk.bf16.mxu0 %vm303_vm1, %v302_v9  ;;  %203 = vmatprep.subr.bf16.mxu0 %v302_v9  ;;  %v194_v40 = vld [vmem:[%s397_s4] ss:$0 sm:$0xff]  ;;  %s179_s25 = sshll.u32 %s304_s1, 4  ;;  %s180_s25 = int_to_ptr.vmem [resolvable:$true] %s179_s25 }
  0x2b   :  { %65 = vadd.xlane.f32.xlu1 %v64_v5  ;;  %s268_s2 = scalar_lea.vmem %s180_s25, 256  ;;  %p273_p3 = scmp.lt.s32.totalorder %s180_s25, %s180_s25 }
  0x2c   :  { %p269_p2 = scmp.ne.s32.totalorder %s180_s25, %s268_s2  ;;  %p274_p4 = scmp.lt.s32.totalorder %s268_s2, %s268_s2 }
  0x2d   :  { %57 = vadd.xlane.f32.xlu0 %v56_v6  ;;  %204 = vmatpush3.bf16.msra.mxu0 %v219_v10 }
  0x2e   :  { %p275_p5 = por %p274_p4, %p273_p3 }
  0x2f   :  { %68 = vadd.xlane.f32.xlu1 %v67_v7 }
  0x30   :  { %p276_p6 = pnand %p275_p5, %p269_p2 }
  0xb6   :  { %v55_v11 = vpop.xlane.xlu0 %54 }
  0xb7   :  { %v60_v12 = vmul.f32 0.03125, %v55_v11 }
  0xb8   :  { %v66_v13 = vpop.xlane.xlu1 %65 }
  0xb9   :  { %v72_v14 = vmul.f32 %v60_v12, %v60_v12  ;;  %v70_v15 = vmul.f32 0.03125, %v66_v13  ;;  %v91_v30 = vsub.f32 %v50_v0, %v60_v12 }
  0xba   :  { %v58_v16 = vpop.xlane.xlu0 %57 }
  0xbb   :  { %v74_v17 = vsub.f32 %v70_v15, %v72_v14  ;;  %v61_v18 = vmul.f32 0.03125, %v58_v16 }
  0xbc   :  { %v69_v19 = vpop.xlane.xlu1 %68 }
  0xbd   :  { %v76_v20 = vmax.f32 %v74_v17, 0.0  ;;  %v73_v21 = vmul.f32 %v61_v18, %v61_v18  ;;  %v71_v22 = vmul.f32 0.03125, %v69_v19  ;;  %v92_v32 = vsub.f32 %v51_v1, %v61_v18 }
  0xbf   :  { %v78_v23 = vadd.f32 1e-05, %v76_v20  ;;  %v75_v24 = vsub.f32 %v71_v22, %v73_v21 }
  0xc1   :  { %220 = vrsqrt.f32 %v78_v23  ;;  %v77_v25 = vmax.f32 %v75_v24, 0.0 }
  0xc3   :  { %v79_v26 = vadd.f32 1e-05, %v77_v25 }
  0xc5   :  { %222 = vrsqrt.f32 %v79_v26 }
  0xcb   :  { %v221_v28 = vpop.eup %220 }
  0xcc   :  { %v89_v29 = vmul.f32 %v221_v28, %v192_v27 }
  0xce   :  { %v93_v34 = vmul.f32 %v91_v30, %v89_v29 }
  0xcf   :  { %v223_v31 = vpop.eup %222 }
  0xd0   :  { %v90_v33 = vmul.f32 %v223_v31, %v192_v27  ;;  %v102_v37 = vadd.f32 %v193_v35, %v93_v34 }
  0xd2   :  { %v94_v36 = vmul.f32 %v92_v32, %v90_v33 }
  0xd4   :  { %v103_v38 = vadd.f32 %v193_v35, %v94_v36 }
  0xd6   :  { %v104_v39 = vpack.c.bf16 %v103_v38, %v102_v37 }
  0xd8   :  { %206 = vmatmul.mubr.msk.bf16.vlgmr.msra.gmra.mrb[0].mxu0 %vm52_vm0, %v104_v39 }
 0x1ab   :  { %v165_v41 = vpop.f32.mrb[0].mxu0 }
 0x1ac   :  { %v166_v42 = vadd.f32 %v194_v40, %v165_v41  ;;  %v207_v43 = vpop.f32.mrb[1].mxu0 }
 0x1ad   :  { %v168_v44 = vpop.f32.mrb[2].mxu0 }
 0x1ae   :  { %172 = vst.msk [vmem:[#allocation7] sm:$0xff] %vm52_vm0, %v166_v42  ;;  %v169_v45 = vadd.f32 %v194_v40, %v168_v44  ;;  %v208_v46 = vpop.f32.mrb[3].mxu0 }
 0x1b0   :  { %173 = vst.msk [vmem:[#allocation7 + $0x8] sm:$0xff] %vm52_vm0, %v169_v45 }
 0x1b1   :  { %279 = shalt.err (!%p276_p6)
}
 0x1b2   :  { %s280_s27 = scalar_lea.hbm %s398_s5, 256 }
 0x1b3   :  { %p281_p7 = scmp.ne.s32.totalorder %s398_s5, %s280_s27  ;;  %p284_p8 = scmp.lt.u32.totalorder %s280_s27, %s398_s5 }
 0x1b5   :  { %p286_p9 = pnand %p284_p8, %p281_p7 }
 0x1b7   :  { %289 = shalt.err (!%p286_p9)
}
 0x1b8   :  { %185 = dma.vmem_to_hbm [thread:$0]  %s180_s25, 256, %s398_s5, [#allocation4], %s297_s28, %s297_s28, %s298_s29  }
 0x1b9   :  { %294 = dma.done.wait [#allocation4], 256  }
 0x1ba   :  { %295 = vsyncadd [#allocation4], 4294967040 }
 0x1bb   :  { %189 = vsyncpa [#allocation3], 1 }
 0x1bc   :  { %190 = vsyncpa [#allocation6], 1 }
 0x1bd   :  { %191 = vsyncpa [#allocation4], 1 }

</bundles_post_ra>
